<compile_context>
chip_gen: v7x
topology: tpu7x:2x2x1
jax: 0.10.0
libtpu: 0.0.40
codegen_flags: <defaults>
</compile_context>

<pallas_src>
import functools

import jax
import jax.numpy as jnp
from jax import lax
from jax.experimental import pallas as pl
from jax.experimental.pallas import tpu as pltpu


_NEG_BIG = -1e30  # finite "-inf" so masked / padded keys can never produce NaNs


def _loop(n, body, init):
    """Static Python loop for short trip counts, lax.fori_loop otherwise."""
    if n <= 8:
        carry = init
        for i in range(n):
            carry = body(i, carry)
        return carry
    return lax.fori_loop(0, n, body, init)


def pam_kernel(x_ref, wq_ref, bq_ref, wk_ref, bk_ref, wv_ref, bv_ref,
               gamma_ref, o_ref, kT_scr, v_scr,
               *, nk, tk, n_real, n_pad, exp_dtype):
    qi = pl.program_id(2)           # query tile inside this split
    nqi = pl.num_programs(2)
    split = pl.program_id(1)        # query split (v7x TensorCore sharding)
    c_dim = o_ref.shape[1]
    tq = o_ref.shape[2]

    # ---- K / V projections: once per (batch, split), chunked over the key
    #      axis.  K is stored pre-transposed (N, Cq) so the per-tile energy
    #      matmul needs no operand transpose (transpose hoisted out of the
    #      query loop and done on the small (Cq, TK) slab).
    @pl.when(qi == 0)
    def _():
        def proj(kt, carry):
            ks = kt * tk
            xs = x_ref[0, :, pl.ds(ks, tk)]                          # (C, TK) bf16
            k = lax.dot_general(wk_ref[...], xs,
                                dimension_numbers=(((1,), (0,)), ((), ())),
                                preferred_element_type=jnp.float32)   # (Cqp, TK)
            kT_scr[pl.ds(ks, tk), :] = (k + bk_ref[...]).T.astype(jnp.bfloat16)
            v = lax.dot_general(wv_ref[...], xs,
                                dimension_numbers=(((1,), (0,)), ((), ())),
                                preferred_element_type=jnp.float32)   # (C, TK)
            v_scr[:, pl.ds(ks, tk)] = (v + bv_ref[...]).astype(jnp.bfloat16)
            return carry
        _loop(nk, proj, 0)

    # ---- Q projection for this query tile (queries stay on lanes).
    start = pl.multiple_of((split * nqi + qi) * tq, tq)
    xq = x_ref[0, :, pl.ds(start, tq)]                               # (C, TQ) bf16
    q = lax.dot_general(wq_ref[...], xq,
                        dimension_numbers=(((1,), (0,)), ((), ())),
                        preferred_element_type=jnp.float32)
    q = (q + bq_ref[...]).astype(jnp.bfloat16)                       # (Cqp, TQ)

    # ---- Online softmax over key chunks; only a (TK, TQ) slab is live.
    def kv_step(kt, carry):
        m, l, acc = carry
        ks = kt * tk
        k_blk = kT_scr[pl.ds(ks, tk), :]                             # (TK, Cqp)
        e = lax.dot_general(k_blk, q,
                            dimension_numbers=(((1,), (0,)), ((), ())),
                            preferred_element_type=jnp.float32)      # (TK, TQ)
        if n_real != n_pad:  # mask zero-padded key columns out of the softmax
            key_id = ks + lax.broadcasted_iota(jnp.int32, (tk, tq), 0)
            e = jnp.where(key_id < n_real, e, jnp.float32(_NEG_BIG))
        m_new = jnp.maximum(m, jnp.max(e, axis=0, keepdims=True))    # (1, TQ) f32
        alpha = jnp.exp(m - m_new)                                   # f32
        p = jnp.exp((e - m_new).astype(exp_dtype))                   # bf16 EUP on v6e/v7x
        l_new = alpha * l + jnp.sum(p.astype(jnp.float32), axis=0, keepdims=True)
        pv = lax.dot_general(v_scr[:, pl.ds(ks, tk)], p.astype(jnp.bfloat16),
                             dimension_numbers=(((1,), (0,)), ((), ())),
                             preferred_element_type=jnp.float32)     # (C, TQ)
        return m_new, l_new, alpha * acc + pv

    m0 = jnp.full((1, tq), _NEG_BIG, dtype=jnp.float32)
    l0 = jnp.zeros((1, tq), dtype=jnp.float32)
    acc0 = jnp.zeros((c_dim, tq), dtype=jnp.float32)
    _, l, acc = _loop(nk, kv_step, (m0, l0, acc0))

    # Softmax normalization folded into the (C, TQ) output via approx reciprocal.
    out = acc * pl.reciprocal(l, approx=True)
    o_ref[0] = (gamma_ref[0] * out + xq.astype(jnp.float32)).astype(o_ref.dtype)


def _pick_tile(n, target):
    """Largest multiple of 128 <= target that divides n (n if n <= target)."""
    if n <= target:
        return n
    t = max((target // 128) * 128, 128)
    while n % t:
        t -= 128
    return t


def _chip_info():
    """(vmem_capacity_bytes, is_v5, has_two_tensorcores), with safe fallbacks."""
    kind = ""
    try:
        kind = jax.devices()[0].device_kind.lower()
    except Exception:
        pass
    is_v5 = "v5" in kind
    two_cores = ("v7" in kind) or ("tpu7" in kind) or ("7x" in kind)
    vmem_cap = (64 << 20) if two_cores else (128 << 20)
    try:
        vmem_cap = int(pltpu.get_tpu_info().vmem_capacity_bytes)
    except Exception:
        pass
    return vmem_cap, is_v5, two_cores


def pam_forward(x_nchw, params, *, tq_target=None, key_chunk=None,
                query_splits=None):
    B, C, H, W = x_nchw.shape
    N = H * W
    Cq = params["wq"].shape[0]

    vmem_cap, is_v5, two_cores = _chip_info()

    # Sublane-minimal padding of the narrow q/k channel dim (NOT 128: the
    # energy matmul is one MXU K-tile either way).
    cq_pad = max(16, ((Cq + 15) // 16) * 16)

    # Pad N to a lane multiple; padded keys are masked inside the kernel.
    n_pad = ((N + 127) // 128) * 128

    if tq_target is None:
        tq_target = 128 if is_v5 else 256        # MXU output width: 128 / 256
    tq = _pick_tile(n_pad, tq_target)
    nq = n_pad // tq

    # Key chunking (online softmax) bounds the live energy/p slab at large N.
    if key_chunk is None:
        key_chunk = n_pad if n_pad <= 4096 else 2048
    tk = _pick_tile(n_pad, key_chunk)
    nk = n_pad // tk

    # Query-axis split ("parallel") so a 2-TensorCore chip (v7x) shares the
    # query tiles even at batch 1; K/V projection is recomputed per split.
    if query_splits is None:
        query_splits = 2 if two_cores else 1
    qs = max(1, min(query_splits, nq))
    while nq % qs:
        qs -= 1
    nqi = nq // qs

    exp_dtype = jnp.float32 if is_v5 else jnp.bfloat16   # no bf16 EUP on v5e

    # ---- parameter prep -------------------------------------------------
    def pad_rows(a, rows):
        return jnp.pad(a, ((0, rows - a.shape[0]), (0, 0)))

    wq = pad_rows(params["wq"], cq_pad).astype(jnp.bfloat16)
    wk = pad_rows(params["wk"], cq_pad).astype(jnp.bfloat16)
    wv = params["wv"].astype(jnp.bfloat16)
    bq = pad_rows(params["bq"].reshape(Cq, 1).astype(jnp.float32), cq_pad)
    bk = pad_rows(params["bk"].reshape(Cq, 1).astype(jnp.float32), cq_pad)
    bv = params["bv"].reshape(C, 1).astype(jnp.float32)
    gamma = params["gamma"].reshape(1).astype(jnp.float32)

    # bf16 x in HBM: halves the dominant DMA and the resident x block.
    x_cn = x_nchw.reshape(B, C, N).astype(jnp.bfloat16)   # free reshape
    if n_pad != N:
        x_cn = jnp.pad(x_cn, ((0, 0), (0, 0), (0, n_pad - N)))

    out_itemsize = jnp.dtype(x_nchw.dtype).itemsize

    # ---- generation-aware VMEM budget ------------------------------------
    needed = (2 * C * n_pad * 2                      # x block (bf16, dbl-buffered)
              + n_pad * max(cq_pad, 128) * 2         # K^T scratch (lane-padded)
              + C * n_pad * 2                        # V scratch
              + 2 * tk * tq * 4                      # energy + p chunk
              + C * tq * 4 + 4 * tq * 4              # acc + m/l
              + 2 * C * tq * out_itemsize            # output block (dbl-buffered)
              + (2 * cq_pad * C + C * C) * 2 + (2 * cq_pad + C + 2) * 4)
    vmem_limit = int(min(max(2 * needed, 32 << 20), vmem_cap - (8 << 20), 112 << 20))

    # Cost estimate from the real (unpadded) dims.
    flops = 2 * B * (2 * N * C * Cq + N * C * C + N * N * Cq + N * N * C)
    bytes_accessed = (B * C * n_pad * 2 + B * C * n_pad * out_itemsize
                      + (2 * Cq * C + C * C) * 2)

    kernel = functools.partial(pam_kernel, nk=nk, tk=tk, n_real=N,
                               n_pad=n_pad, exp_dtype=exp_dtype)

    out_cn = pl.pallas_call(
        kernel,
        out_shape=jax.ShapeDtypeStruct((B, C, n_pad), x_nchw.dtype),
        grid_spec=pltpu.PrefetchScalarGridSpec(
            num_scalar_prefetch=0,
            grid=(B, qs, nqi),
            in_specs=[
                pl.BlockSpec((1, C, n_pad), lambda b, s, q: (b, 0, 0)),  # x (bf16)
                pl.BlockSpec((cq_pad, C), lambda b, s, q: (0, 0)),       # Wq
                pl.BlockSpec((cq_pad, 1), lambda b, s, q: (0, 0)),       # bq
                pl.BlockSpec((cq_pad, C), lambda b, s, q: (0, 0)),       # Wk
                pl.BlockSpec((cq_pad, 1), lambda b, s, q: (0, 0)),       # bk
                pl.BlockSpec((C, C), lambda b, s, q: (0, 0)),            # Wv
                pl.BlockSpec((C, 1), lambda b, s, q: (0, 0)),            # bv
                pl.BlockSpec(memory_space=pltpu.MemorySpace.SMEM),       # gamma
            ],
            out_specs=pl.BlockSpec((1, C, tq),
                                   lambda b, s, q: (b, 0, s * nqi + q)),
            scratch_shapes=[
                pltpu.VMEM((n_pad, cq_pad), jnp.bfloat16),   # K^T projection
                pltpu.VMEM((C, n_pad), jnp.bfloat16),        # V projection
            ],
        ),
        compiler_params=pltpu.CompilerParams(
            # K/V scratch carried across query tiles -> inner axis "arbitrary";
            # batch and query-split axes are parallel (megacore / v7x sharding).
            dimension_semantics=("parallel", "parallel", "arbitrary"),
            vmem_limit_bytes=vmem_limit,
        ),
        cost_estimate=pl.CostEstimate(
            flops=flops, transcendentals=B * N * N,
            bytes_accessed=bytes_accessed),
    )(x_cn, wq, bq, wk, bk, wv, bv, gamma)

    if n_pad != N:
        out_cn = out_cn[:, :, :N]
    return out_cn.reshape(B, C, H, W)


def pam_reference(x, params):
    """Pure-JAX (f32) reference mirroring the PyTorch forward, NCHW."""
    B, C, H, W = x.shape
    N = H * W

    def conv1x1(t, w, b):
        return jnp.einsum("bchw,oc->bohw", t, w) + b[None, :, None, None]

    q = conv1x1(x, params["wq"], params["bq"]).reshape(B, -1, N).transpose(0, 2, 1)
    k = conv1x1(x, params["wk"], params["bk"]).reshape(B, -1, N)
    energy = jnp.einsum("bnc,bcm->bnm", q, k)
    attn = jax.nn.softmax(energy, axis=-1)
    v = conv1x1(x, params["wv"], params["bv"]).reshape(B, -1, N)
    out = jnp.einsum("bcn,bmn->bcm", v, attn).reshape(B, C, H, W)
    return params["gamma"][0] * out + x


def _run_case(B, C, H, W, key, **fwd_kwargs):
    Cq = max(C // 8, 1)
    kx, kq, kk, kv, kbq, kbk, kbv = jax.random.split(key, 7)
    x = jax.random.normal(kx, (B, C, H, W), dtype=jnp.float32)
    scale = 1.0 / jnp.sqrt(jnp.float32(C))
    params = {
        "wq": jax.random.normal(kq, (Cq, C), dtype=jnp.float32) * scale,
        "bq": jax.random.normal(kbq, (Cq,), dtype=jnp.float32) * 0.01,
        "wk": jax.random.normal(kk, (Cq, C), dtype=jnp.float32) * scale,
        "bk": jax.random.normal(kbk, (Cq,), dtype=jnp.float32) * 0.01,
        "wv": jax.random.normal(kv, (C, C), dtype=jnp.float32) * scale,
        "bv": jax.random.normal(kbv, (C,), dtype=jnp.float32) * 0.01,
        # Module inits gamma to 0 (output == x); nonzero here so the attention
        # path is exercised numerically.
        "gamma": jnp.full((1,), 0.5, dtype=jnp.float32),
    }
    out = pam_forward(x, params, **fwd_kwargs)
    jax.block_until_ready(out)
    ref = pam_reference(x, params)
    assert out.shape == x.shape
    err = float(jnp.max(jnp.abs(out - ref)))
    # bf16 x / q / k / v / p, bf16 exp (non-v5e) and approx reciprocal vs an
    # all-f32 reference -> loose tolerance (structural bugs are O(1) errors).
    assert jnp.allclose(out, ref, atol=1e-1, rtol=1e-1), f"max abs err {err}"
    return err


if __name__ == "__main__":
    root = jax.random.PRNGKey(0)
    k1, k2 = jax.random.split(root)
    # Case 1: in_dim = 16, N = 64 -> padded to 128 keys; exercises the
    # padded-key masking path (nk = 1, single query tile).
    _run_case(2, 16, 8, 8, k1)
    # Case 2: N = 256 with forced key chunking (online-softmax rescale, nk = 2)
    # and a 2-way query split (the v7x TensorCore-sharded grid).
    _run_case(1, 32, 16, 16, k2, tq_target=128, key_chunk=128, query_splits=2)
    print("KERNEL_OK")
</pallas_src>

<mosaic_0001>
module attributes {stable_mosaic.version = 11 : i64} {
  func.func @pam_kernel(%arg0: i32, %arg1: i32, %arg2: i32, %arg3: memref<1x16x128xbf16, #tpu.memory_space<vmem>>, %arg4: memref<16x16xbf16, #tpu.memory_space<vmem>>, %arg5: memref<16x1xf32, #tpu.memory_space<vmem>>, %arg6: memref<16x16xbf16, #tpu.memory_space<vmem>>, %arg7: memref<16x1xf32, #tpu.memory_space<vmem>>, %arg8: memref<16x16xbf16, #tpu.memory_space<vmem>>, %arg9: memref<16x1xf32, #tpu.memory_space<vmem>>, %arg10: memref<1xf32, #tpu.memory_space<smem>>, %arg11: memref<1x16x128xf32, #tpu.memory_space<vmem>>, %arg12: memref<128x16xbf16, #tpu.memory_space<vmem>>, %arg13: memref<16x128xbf16, #tpu.memory_space<vmem>>) attributes {dimension_semantics = [#tpu.dimension_semantics<parallel>, #tpu.dimension_semantics<parallel>, #tpu.dimension_semantics<arbitrary>], iteration_bounds = array<i64: 2, 1, 1>, scalar_prefetch = 0 : i64, scratch_operands = 2 : i64, tpu.core_type = #tpu.core_type<tc>, window_params = [{transform_indices = @transform_0, window_bounds = array<i64: 1, 16, 128>}, {pipeline_mode = #tpu.pipeline_mode<synchronous>, transform_indices = @transform_1, window_bounds = array<i64: 16, 16>}, {pipeline_mode = #tpu.pipeline_mode<synchronous>, transform_indices = @transform_2, window_bounds = array<i64: 16, 1>}, {pipeline_mode = #tpu.pipeline_mode<synchronous>, transform_indices = @transform_3, window_bounds = array<i64: 16, 16>}, {pipeline_mode = #tpu.pipeline_mode<synchronous>, transform_indices = @transform_4, window_bounds = array<i64: 16, 1>}, {pipeline_mode = #tpu.pipeline_mode<synchronous>, transform_indices = @transform_5, window_bounds = array<i64: 16, 16>}, {pipeline_mode = #tpu.pipeline_mode<synchronous>, transform_indices = @transform_6, window_bounds = array<i64: 16, 1>}, {transform_indices = @transform_7, window_bounds = array<i64: 1>}, {transform_indices = @transform_8, window_bounds = array<i64: 1, 16, 128>}]} {
    %c0_i32 = arith.constant 0 : i32
    %0 = arith.cmpi eq, %arg2, %c0_i32 : i32
    %1 = arith.extui %0 : i1 to i32
    %c0_i32_0 = arith.constant 0 : i32
    %2 = arith.cmpi ne, %1, %c0_i32_0 : i32
    scf.if %2 {
      %c0_23 = arith.constant 0 : index
      %c0_24 = arith.constant 0 : index
      %c0_25 = arith.constant 0 : index
      %58 = vector.load %arg3[%c0_23, %c0_24, %c0_25] : memref<1x16x128xbf16, #tpu.memory_space<vmem>>, vector<1x16x128xbf16>
      %59 = vector.shape_cast %58 : vector<1x16x128xbf16> to vector<16x128xbf16>
      %c0_26 = arith.constant 0 : index
      %c0_27 = arith.constant 0 : index
      %60 = vector.load %arg6[%c0_26, %c0_27] : memref<16x16xbf16, #tpu.memory_space<vmem>>, vector<16x16xbf16>
      %cst_28 = arith.constant dense<0.000000e+00> : vector<16x128xf32>
      %61 = tpu.matmul %60, %59, %cst_28 {dimension_numbers = #tpu.dot_dimension_numbers<[1], [0], [0], [1], [0, 0, 1, 1], [], []>} : vector<16x16xbf16>, vector<16x128xbf16>, vector<16x128xf32> -> vector<16x128xf32>
      %c0_29 = arith.constant 0 : index
      %c0_30 = arith.constant 0 : index
      %62 = vector.load %arg7[%c0_29, %c0_30] : memref<16x1xf32, #tpu.memory_space<vmem>>, vector<16x1xf32>
      %63 = vector.broadcast %62 : vector<16x1xf32> to vector<16x128xf32>
      %64 = arith.addf %61, %63 : vector<16x128xf32>
      %65 = tpu.transpose %64, [1, 0] : vector<16x128xf32> -> vector<128x16xf32>
      %66 = arith.truncf %65 : vector<128x16xf32> to vector<128x16xbf16>
      %c0_31 = arith.constant 0 : index
      %c0_32 = arith.constant 0 : index
      %67 = vector.load %arg12[%c0_31, %c0_32] : memref<128x16xbf16, #tpu.memory_space<vmem>>, vector<128x16xbf16>
      tpu.vector_store %arg12[%c0_31, %c0_32], %66 {strides = array<i32>} : memref<128x16xbf16, #tpu.memory_space<vmem>>, vector<128x16xbf16>,
      %c0_33 = arith.constant 0 : index
      %c0_34 = arith.constant 0 : index
      %68 = vector.load %arg8[%c0_33, %c0_34] : memref<16x16xbf16, #tpu.memory_space<vmem>>, vector<16x16xbf16>
      %cst_35 = arith.constant dense<0.000000e+00> : vector<16x128xf32>
      %69 = tpu.matmul %68, %59, %cst_35 {dimension_numbers = #tpu.dot_dimension_numbers<[1], [0], [0], [1], [0, 0, 1, 1], [], []>} : vector<16x16xbf16>, vector<16x128xbf16>, vector<16x128xf32> -> vector<16x128xf32>
      %c0_36 = arith.constant 0 : index
      %c0_37 = arith.constant 0 : index
      %70 = vector.load %arg9[%c0_36, %c0_37] : memref<16x1xf32, #tpu.memory_space<vmem>>, vector<16x1xf32>
      %71 = vector.broadcast %70 : vector<16x1xf32> to vector<16x128xf32>
      %72 = arith.addf %69, %71 : vector<16x128xf32>
      %73 = arith.truncf %72 : vector<16x128xf32> to vector<16x128xbf16>
      %c0_38 = arith.constant 0 : index
      %c0_39 = arith.constant 0 : index
      %74 = vector.load %arg13[%c0_38, %c0_39] : memref<16x128xbf16, #tpu.memory_space<vmem>>, vector<16x128xbf16>
      tpu.vector_store %arg13[%c0_38, %c0_39], %73 {strides = array<i32>} : memref<16x128xbf16, #tpu.memory_space<vmem>>, vector<16x128xbf16>,
    } else {
    }
    %c1_i32 = arith.constant 1 : i32
    %3 = arith.muli %arg1, %c1_i32 : i32
    %4 = arith.addi %3, %arg2 : i32
    %c128_i32 = arith.constant 128 : i32
    %5 = arith.muli %4, %c128_i32 : i32
    %6 = tpu.assume_multiple %5, 128 : i32
    %c0 = arith.constant 0 : index
    %c0_1 = arith.constant 0 : index
    %7 = arith.index_cast %6 : i32 to index
    %8 = vector.load %arg3[%c0, %c0_1, %7] : memref<1x16x128xbf16, #tpu.memory_space<vmem>>, vector<1x16x128xbf16>
    %9 = vector.shape_cast %8 : vector<1x16x128xbf16> to vector<16x128xbf16>
    %c0_2 = arith.constant 0 : index
    %c0_3 = arith.constant 0 : index
    %10 = vector.load %arg4[%c0_2, %c0_3] : memref<16x16xbf16, #tpu.memory_space<vmem>>, vector<16x16xbf16>
    %cst = arith.constant dense<0.000000e+00> : vector<16x128xf32>
    %11 = tpu.matmul %10, %9, %cst {dimension_numbers = #tpu.dot_dimension_numbers<[1], [0], [0], [1], [0, 0, 1, 1], [], []>} : vector<16x16xbf16>, vector<16x128xbf16>, vector<16x128xf32> -> vector<16x128xf32>
    %c0_4 = arith.constant 0 : index
    %c0_5 = arith.constant 0 : index
    %12 = vector.load %arg5[%c0_4, %c0_5] : memref<16x1xf32, #tpu.memory_space<vmem>>, vector<16x1xf32>
    %13 = vector.broadcast %12 : vector<16x1xf32> to vector<16x128xf32>
    %14 = arith.addf %11, %13 : vector<16x128xf32>
    %15 = arith.truncf %14 : vector<16x128xf32> to vector<16x128xbf16>
    %cst_6 = arith.constant -1.000000e+30 : f32
    %16 = vector.broadcast %cst_6 : f32 to vector<1x128xf32>
    %cst_7 = arith.constant 0.000000e+00 : f32
    %17 = vector.broadcast %cst_7 : f32 to vector<1x128xf32>
    %cst_8 = arith.constant 0.000000e+00 : f32
    %18 = vector.broadcast %cst_8 : f32 to vector<16x128xf32>
    %c0_9 = arith.constant 0 : index
    %c0_10 = arith.constant 0 : index
    %19 = vector.load %arg12[%c0_9, %c0_10] : memref<128x16xbf16, #tpu.memory_space<vmem>>, vector<128x16xbf16>
    %cst_11 = arith.constant dense<0.000000e+00> : vector<128x128xf32>
    %20 = tpu.matmul %19, %15, %cst_11 {dimension_numbers = #tpu.dot_dimension_numbers<[1], [0], [0], [1], [0, 0, 1, 1], [], []>} : vector<128x16xbf16>, vector<16x128xbf16>, vector<128x128xf32> -> vector<128x128xf32>
    %21 = tpu.iota {dimensions = array<i32: 0>} : vector<128x128xi32>
    %c0_i32_12 = arith.constant 0 : i32
    %22 = vector.broadcast %c0_i32_12 : i32 to vector<128x128xi32>
    %23 = arith.addi %22, %21 : vector<128x128xi32>
    %c64_i32 = arith.constant 64 : i32
    %24 = vector.broadcast %c64_i32 : i32 to vector<128x128xi32>
    %25 = arith.cmpi slt, %23, %24 : vector<128x128xi32>
    %cst_13 = arith.constant -1.000000e+30 : f32
    %26 = vector.broadcast %cst_13 : f32 to vector<128x128xf32>
    %27 = arith.select %25, %20, %26 : vector<128x128xi1>, vector<128x128xf32>
    %cst_14 = arith.constant dense<0xFF800000> : vector<128xf32>
    %28 = vector.multi_reduction <maximumf>, %27, %cst_14 [0] : vector<128x128xf32> to vector<128xf32>
    %29 = vector.shape_cast %28 : vector<128xf32> to vector<1x128xf32>
    %30 = arith.maximumf %16, %29 : vector<1x128xf32>
    %31 = arith.subf %16, %30 : vector<1x128xf32>
    %32 = math.exp %31 : vector<1x128xf32>
    %33 = vector.broadcast %30 : vector<1x128xf32> to vector<128x128xf32>
    %34 = arith.subf %27, %33 : vector<128x128xf32>
    %35 = arith.truncf %34 : vector<128x128xf32> to vector<128x128xbf16>
    %36 = math.exp %35 : vector<128x128xbf16>
    %37 = arith.mulf %32, %17 : vector<1x128xf32>
    %38 = arith.extf %36 : vector<128x128xbf16> to vector<128x128xf32>
    %cst_15 = arith.constant dense<0.000000e+00> : vector<128xf32>
    %39 = vector.multi_reduction <add>, %38, %cst_15 [0] : vector<128x128xf32> to vector<128xf32>
    %40 = vector.shape_cast %39 : vector<128xf32> to vector<1x128xf32>
    %41 = arith.addf %37, %40 : vector<1x128xf32>
    %c0_16 = arith.constant 0 : index
    %c0_17 = arith.constant 0 : index
    %42 = vector.load %arg13[%c0_16, %c0_17] : memref<16x128xbf16, #tpu.memory_space<vmem>>, vector<16x128xbf16>
    %cst_18 = arith.constant dense<0.000000e+00> : vector<16x128xf32>
    %43 = tpu.matmul %42, %36, %cst_18 {dimension_numbers = #tpu.dot_dimension_numbers<[1], [0], [0], [1], [0, 0, 1, 1], [], []>} : vector<16x128xbf16>, vector<128x128xbf16>, vector<16x128xf32> -> vector<16x128xf32>
    %44 = vector.broadcast %32 : vector<1x128xf32> to vector<16x128xf32>
    %45 = arith.mulf %44, %18 : vector<16x128xf32>
    %46 = arith.addf %45, %43 : vector<16x128xf32>
    %47 = tpu.reciprocal %41 {approx = true} : vector<1x128xf32> -> vector<1x128xf32>
    %48 = vector.broadcast %47 : vector<1x128xf32> to vector<16x128xf32>
    %49 = arith.mulf %46, %48 : vector<16x128xf32>
    %c0_19 = arith.constant 0 : index
    %50 = memref.load %arg10[%c0_19] : memref<1xf32, #tpu.memory_space<smem>>
    %51 = vector.broadcast %50 : f32 to vector<16x128xf32>
    %52 = arith.mulf %51, %49 : vector<16x128xf32>
    %53 = arith.extf %9 : vector<16x128xbf16> to vector<16x128xf32>
    %54 = arith.addf %52, %53 : vector<16x128xf32>
    %c0_20 = arith.constant 0 : index
    %c0_21 = arith.constant 0 : index
    %c0_22 = arith.constant 0 : index
    %55 = vector.load %arg11[%c0_20, %c0_21, %c0_22] : memref<1x16x128xf32, #tpu.memory_space<vmem>>, vector<1x16x128xf32>
    %56 = vector.shape_cast %55 : vector<1x16x128xf32> to vector<16x128xf32>
    %57 = vector.shape_cast %54 : vector<16x128xf32> to vector<1x16x128xf32>
    tpu.vector_store %arg11[%c0_20, %c0_21, %c0_22], %57 {strides = array<i32>} : memref<1x16x128xf32, #tpu.memory_space<vmem>>, vector<1x16x128xf32>,
    return
  }
  func.func @transform_0(%arg0: i32, %arg1: i32, %arg2: i32) -> (i32, i32, i32) {
    %c0_i32 = arith.constant 0 : i32
    %c0_i32_0 = arith.constant 0 : i32
    %c0_i32_1 = arith.constant 0 : i32
    return %arg0, %c0_i32, %c0_i32_0 : i32, i32, i32
  }
  func.func @transform_1(%arg0: i32, %arg1: i32, %arg2: i32) -> (i32, i32) {
    %c0_i32 = arith.constant 0 : i32
    %c0_i32_0 = arith.constant 0 : i32
    %c0_i32_1 = arith.constant 0 : i32
    return %c0_i32, %c0_i32_0 : i32, i32
  }
  func.func @transform_2(%arg0: i32, %arg1: i32, %arg2: i32) -> (i32, i32) {
    %c0_i32 = arith.constant 0 : i32
    %c0_i32_0 = arith.constant 0 : i32
    %c0_i32_1 = arith.constant 0 : i32
    return %c0_i32, %c0_i32_0 : i32, i32
  }
  func.func @transform_3(%arg0: i32, %arg1: i32, %arg2: i32) -> (i32, i32) {
    %c0_i32 = arith.constant 0 : i32
    %c0_i32_0 = arith.constant 0 : i32
    %c0_i32_1 = arith.constant 0 : i32
    return %c0_i32, %c0_i32_0 : i32, i32
  }
  func.func @transform_4(%arg0: i32, %arg1: i32, %arg2: i32) -> (i32, i32) {
    %c0_i32 = arith.constant 0 : i32
    %c0_i32_0 = arith.constant 0 : i32
    %c0_i32_1 = arith.constant 0 : i32
    return %c0_i32, %c0_i32_0 : i32, i32
  }
  func.func @transform_5(%arg0: i32, %arg1: i32, %arg2: i32) -> (i32, i32) {
    %c0_i32 = arith.constant 0 : i32
    %c0_i32_0 = arith.constant 0 : i32
    %c0_i32_1 = arith.constant 0 : i32
    return %c0_i32, %c0_i32_0 : i32, i32
  }
  func.func @transform_6(%arg0: i32, %arg1: i32, %arg2: i32) -> (i32, i32) {
    %c0_i32 = arith.constant 0 : i32
    %c0_i32_0 = arith.constant 0 : i32
    %c0_i32_1 = arith.constant 0 : i32
    return %c0_i32, %c0_i32_0 : i32, i32
  }
  func.func @transform_7(%arg0: i32, %arg1: i32, %arg2: i32) -> i32 {
    %c0_i32 = arith.constant 0 : i32
    %c0_i32_0 = arith.constant 0 : i32
    return %c0_i32 : i32
  }
  func.func @transform_8(%arg0: i32, %arg1: i32, %arg2: i32) -> (i32, i32, i32) {
    %c1_i32 = arith.constant 1 : i32
    %0 = arith.muli %arg1, %c1_i32 : i32
    %1 = arith.addi %0, %arg2 : i32
    %c0_i32 = arith.constant 0 : i32
    %c0_i32_0 = arith.constant 0 : i32
    return %arg0, %c0_i32, %1 : i32, i32, i32
  }
}

</mosaic_0001>

<bundles_post_ra>
// kernel: tpu_custom_call.1
= control target key start
LH: loop header
LB: loop body
LE: loop exit
PB: predicated region body
PF: predicated region fallthrough
CT: control target
= control target key end

     0   :  { %s1560_s0 = inlined_call_operand.vmem [shape: bf16[2,16,128], index: 0, kind: input, shape index: {}]   ;;  %s1561_s1 = inlined_call_operand.vmem [shape: bf16[16,16], index: 1, kind: input, shape index: {}]   ;;  %s1562_s2 = inlined_call_operand.vmem [shape: f32[16,1], index: 2, kind: input, shape index: {}]   ;;  %s1563_s3 = inlined_call_operand.vmem [shape: bf16[16,16], index: 3, kind: input, shape index: {}]   ;;  %s1564_s4 = inlined_call_operand.vmem [shape: f32[16,1], index: 4, kind: input, shape index: {}]   ;;  %s1565_s5 = inlined_call_operand.vmem [shape: bf16[16,16], index: 5, kind: input, shape index: {}]   ;;  %s1566_s6 = inlined_call_operand.vmem [shape: f32[16,1], index: 6, kind: input, shape index: {}]   ;;  %s1567_s7 = inlined_call_operand.<no memory space> [shape: f32[1], index: 7, kind: input, shape index: {}]   ;;  %s1568_s8 = inlined_call_operand.hbm [shape: f32[2,16,128], index: 8, kind: output, shape index: {}]  }
   0x1   :  { %13 = sst [smem:[#allocation4]] %s1567_s7 }
   0x2   :  { %14 = vsyncpa [#allocation6], 0 }
   0x3   :  { %16 = vsyncpa [#allocation6 + $0x1], 0  ;;  %s1366_s29 = smov 0   ;;  %s1368_s30 = smov 0  }
   0x4   :  { %s1370_s9 = smov 0   ;;  %s1372_s10 = smov 0  }
   0x5   :  { %s1374_s11 = smov 0   ;;  %s1376_s12 = smov 0  }
   0x6 LB: > { %s1039_s7 = sadd.s32 4294967295, %s1310_s12   ;;  %s1040_s13 = sadd.s32 4294967294, %s1310_s12   ;;  %s1310_s12 = sphi %s1376_s12, %s22_s12   ;;  %s1306_s11 = sphi %s1374_s11, %s1575_s11   ;;  %s1302_s10 = sphi %s1372_s10, %s1574_s10   ;;  %s1298_s9 = sphi %s1370_s9, %s1573_s9   ;;  %s1294_s30 = sphi %s1368_s30, %s1572_s30   ;;  %s1290_s29 = sphi %s1366_s29, %s1571_s29  }
   0x7   : > { %s41_s14 = sadd.s32 1, %s1306_s11  ;;  %s225_s15 = sadd.s32 1, %s1298_s9 }
   0x8   : > { %p43_p0 = scmp.ge.s32.totalorder %s41_s14, 2  ;;  %p235_p1 = scmp.ne.s32.totalorder %s1298_s9, %s1294_s30 }
   0x9   : > { %p236_p2 = scmp.eq.s32.totalorder %s1039_s7, 1  ;;  %p241_p3 = scmp.ne.s32.totalorder %s1294_s30, %s1290_s29 }
   0xa   : > { %s1577_s14 = smov (%p43_p0, %s41_s14), 0  ;;  %p242_p5 = scmp.eq.s32.totalorder %s1040_s13, 1 }
   0xb   : > { %p1406_p4 = por %p236_p2, %p235_p1  ;;  %s220_s17 = ssub.s32 %s1306_s11, %s1577_s14 }
   0xc   : > { %p1043_p6 = scmp.ge.s32.totalorder %s1310_s12, 1  ;;  %p223_p7 = scmp.eq.s32.totalorder %s220_s17, 0 }
   0xd   : > { %p1413_p8 = por %p242_p5, %p241_p3  ;;  %p289_p9 = scmp.lt.s32.totalorder %s1310_s12, 3 }
   0xe   : > { %s1419_s19 = scalar_select %p223_p7, %s1298_s9, %s225_s15  }
   0xf   : > { %p290_p10 = pnand %p1043_p6, %p289_p9 }
  0x10   : > { %p323_p11 = scmp.lt.s32.totalorder (!%p290_p10), %s1302_s10, 1  ;;  %v1312_v0 = vmov (!%p290_p10), 0.0   ;;  %vm1313_vm0 = vmmov (!%p290_p10), 0   ;;  %v338_v1 = vld [vmem:[%s1564_s4] sm:$0xff] (!%p290_p10)  ;;  %v1314_v2 = vmov (!%p290_p10), 0   ;;  %v339_v3 = vld [vmem:[%s1564_s4 + $0x8] sm:$0xff] (!%p290_p10) }
  0x11   : > { %293 = sbr.rel (%p290_p10) target bundleno = 938 (0x3aa), region = 52  ;;  %1094 = vmatprep.subr.bf16.mxu0 (!%p290_p10), %v1312_v0  ;;  %1096 = vmatprep.mubr.msk.bf16.mxu0 (!%p290_p10), %vm1313_vm0, %v1312_v0  ;;  %v1213_v5 = vld [vmem:[%s1563_s3] sm:$0xff] (!%p290_p10)   ;;  %vm361_vm1 = vcmask (!%p290_p10), 130048   ;;  %v530_v10 = vld [vmem:[%s1562_s2 + $0x8] sm:$0xff] (!%p290_p10)  ;;  %s935_s13 = sld [smem:[#allocation4]] (!%p290_p10) }
  0x12   : > { %1210 = vset.pattern.permute.xlu0 (!%p290_p10), %v1314_v2  ;;  %1100 = vmatprep.subr.bf16.mxu1 (!%p290_p10), %v1312_v0  ;;  %v1216_v7 = vld [vmem:[%s1565_s5] sm:$0xff] (!%p290_p10)   ;;  %v457_v12 = vld [vmem:[%s1566_s6 + $0x8] sm:$0xff] (!%p290_p10)  ;;  %s320_s15 = sand.u32 (!%p290_p10), 1, %s1294_s30   ;;  %s1069_s20 = sshll.u32 (!%p290_p10), %s1302_s10, 8 }
  0x13   : > { %342 = vperm.xlu0 (!%p290_p10), %1210, %v338_v1   ;;  %1102 = vmatprep.mubr.msk.bf16.mxu1 (!%p290_p10), %vm1313_vm0, %v1312_v0  ;;  %v1215_v8 = vld [vmem:[%s1561_s1] sm:$0xff] (!%p290_p10)   ;;  %s1044_s17 = sshll.u32 (!%p290_p10), %s320_s15, 4  ;;  %s1510_s25 = scalar_lea.hbm (!%p290_p10), %s1568_s8, %s1069_s20 }
  0x14   : > { %1211 = vset.pattern.permute.xlu1 (!%p290_p10), %v1314_v2  ;;  %v529_v9 = vld [vmem:[%s1562_s2] sm:$0xff] (!%p290_p10)  ;;  %s322_s21 = scalar_lea.vmem (!%p290_p10), [#allocation5], %s1044_s17  ;;  %s1514_s26 = scalar_lea.sflag (!%p290_p10), [#allocation6], %s320_s15 }
  0x15   : > { %533 = vperm.xlu1 (!%p290_p10), %1211, %v529_v9   ;;  %v456_v11 = vld [vmem:[%s1566_s6] sm:$0xff] (!%p290_p10)  ;;  %s1315_s27 = smov (!%p290_p10), [#allocation5]  }
  0x17   : > { %347 = vperm.xlu0 (!%p290_p10), %1210, %v339_v3  }
  0x18   : > { %s324_s22 = scalar_select %p323_p11, %s1302_s10, 1 }
  0x19   : > { %538 = vperm.xlu1 %1211, %v530_v10  }
  0x1a   : > { %s1068_s23 = sshll.u32 %s324_s22, 3  ;;  %s961_s22 = sshll.u32 %s322_s21, 4  ;;  %s1512_s22 = int_to_ptr.vmem [resolvable:$true] %s961_s22 }
  0x1b   : > { %s327_s28 = scalar_lea.vmem %s1560_s0, %s1068_s23  ;;  %s1232_s10 = scalar_lea.vmem %s1512_s22, 256 }
  0x1c   : > { %v1212_v4 = vld [vmem:[%s327_s28] sm:$0xff]   ;;  %p1233_p12 = scmp.ne.s32.totalorder %s1512_s22, %s1232_s10 }
  0x1d   : > { %v1441_v6 = vld [vmem:[%s327_s28] sm:$0xff]   ;;  %1095 = vmatpush3.bf16.msra.mxu0 %v1212_v4  ;;  %1101 = vmatpush3.bf16.msra.mxu1 %v1212_v4  ;;  %s1236_s28 = sshll.u32 %s1315_s27, 4  ;;  %s1237_s28 = int_to_ptr.vmem [resolvable:$false] %s1236_s28 }
  0x1e   : > { %1106 = vmatprep.subr.bf16.mxu0 %v1312_v0  ;;  %460 = vperm.xlu1 %1211, %v456_v11   ;;  %p1234_p13 = pnand %p1233_p12, %p1406_p4  ;;  %s1238_s7 = scalar_lea.vmem %s1237_s28, 512 }
  0x1f   : > { %p1239_p1 = scmp.lt.s32.totalorder %s1512_s22, %s1237_s28  ;;  %p1240_p2 = scmp.lt.s32.totalorder %s1238_s7, %s1232_s10 }
  0x20   : > { %1097 = vmatmul.mubr.msk.bf16.vlgmr.msra.gmra.mrb[0].mxu0 %vm361_vm1, %v1213_v5  ;;  %1103 = vmatmul.mubr.msk.bf16.vlgmr.msra.gmra.mrb[0].mxu1 %vm361_vm1, %v1216_v7  ;;  %p1235_p0 = pneg %p1234_p13 }
  0x21   : > { %1107 = vmatpush3.bf16.msra.mxu0 %v1441_v6  ;;  %1108 = vmatprep.mubr.msk.bf16.mxu0 %vm1313_vm0, %v1312_v0  ;;  %p1241_p3 = por %p1240_p2, %p1239_p1 }
  0x22   : > { %1130 = vmatprep.subr.bf16.mxu0 %v1312_v0  ;;  %465 = vperm.xlu1 %1211, %v457_v12  }
  0x23   : > { %p1242_p5 = pnand %p1241_p3, %p1235_p0 }
  0x28   : > { %1109 = vmatmul.mubr.msk.bf16.vlgmr.msra.gmra.mrb[4].mxu0 %vm361_vm1, %v1215_v8 }
  0x29   : > { %1146 = vmatprep.mubr.msk.bf16.mxu0 %vm1313_vm0, %v1312_v0 }
  0x92   : > { %v343_v13 = vpop.permute.xlu0 %342 }
  0x94   : > { %v534_v20 = vpop.permute.xlu1 %533 }
  0x96   : > { %v348_v19 = vpop.permute.xlu0 %347 }
  0x98   : > { %v539_v22 = vpop.permute.xlu1 %538 }
  0x9d   : > { %v461_v27 = vpop.permute.xlu1 %460 }
  0xa1   : > { %v466_v32 = vpop.permute.xlu1 %465 }
  0xf3   : > { %v399_v14 = vpop.f32.mrb[0].mxu0  ;;  %v510_v24 = vpop.f32.mrb[0].mxu1 }
  0xf4   : > { %v400_v15 = vadd.f32 %v399_v14, %v343_v13  ;;  %v1098_v16 = vpop.f32.mrb[1].mxu0  ;;  %v1104_v26 = vpop.f32.mrb[1].mxu1  ;;  %v1471_v29 = vadd.f32 %v510_v24, %v461_v27 }
  0xf5   : > { %v402_v17 = vpop.f32.mrb[2].mxu0  ;;  %v513_v33 = vpop.f32.mrb[2].mxu1 }
  0xf6   : > { %406 = vxpose.xlu0.b32.start [1/2] (short) %v400_v15, 128  ;;  %v1099_v18 = vpop.f32.mrb[3].mxu0  ;;  %v403_v21 = vadd.f32 %v402_v17, %v348_v19  ;;  %v1473_v34 = vadd.f32 %v513_v33, %v466_v32  ;;  %v1105_v36 = vpop.f32.mrb[3].mxu1 }
  0xf8   : > { %v517_v38 = vpack.c.bf16 %v1473_v34, %v1471_v29 }
  0xfa   : > { %407 = vxpose.xlu0.b32.end [2/2] (short) %v403_v21, 128 }
  0xfb   : > { %v590_v23 = vpop.f32.mrb[4].mxu0 }
  0xfc   : > { %v1110_v25 = vpop.f32.mrb[5].mxu0  ;;  %v591_v28 = vadd.f32 %v590_v23, %v534_v20 }
  0xfd   : > { %v593_v30 = vpop.f32.mrb[6].mxu0 }
  0xfe   : > { %v594_v31 = vadd.f32 %v593_v30, %v539_v22  ;;  %v1111_v35 = vpop.f32.mrb[7].mxu0 }
 0x100   : > { %v597_v37 = vpack.c.bf16 %v594_v31, %v591_v28 }
 0x102   : > { %1112 = vmatprep.subr.bf16.mxu1 %v597_v37 }
 0x103   : > { %1113 = vmatpush3.bf16.msra.mxu1 %v597_v37 }
 0x176   : > { %v422_v39 = vpop.trf.xlu0 }
 0x17a   : > { %v423_v40 = vpop.trf.xlu0 }
 0x17b   : > { %v438_v41 = vpack.c.bf16 %v423_v40, %v422_v39 }
 0x17d   : > { %446 = vst.msk [vmem:[#allocation2] sm:$0xff] %vm361_vm1, %v438_v41 }
 0x17e   : > { %v424_v42 = vpop.trf.xlu0 }
 0x182   : > { %v425_v43 = vpop.trf.xlu0 }
 0x183   : > { %v439_v44 = vpack.c.bf16 %v425_v43, %v424_v42 }
 0x184   : > { %v598_v45 = vld [vmem:[#allocation2] sm:$0xff] }
 0x185   : > { %447 = vst.msk [vmem:[#allocation2 + $0x8] sm:$0xff] %vm361_vm1, %v439_v44  ;;  %1114 = vmatprep.mubr.msk.bf16.mxu1 %vm361_vm1, %v598_v45 }
 0x186   : > { %v426_v46 = vpop.trf.xlu0 }
 0x18a   : > { %v427_v47 = vpop.trf.xlu0 }
 0x18b   : > { %v440_v48 = vpack.c.bf16 %v427_v47, %v426_v46 }
 0x18c   : > { %v599_v49 = vld [vmem:[#allocation2 + $0x8] sm:$0xff] }
 0x18d   : > { %448 = vst.msk [vmem:[#allocation2 + $0x10] sm:$0xff] %vm361_vm1, %v440_v48  ;;  %1115 = vmatmul.mubr.msk.bf16.vlgmr.msra.gmra.mrb[4].mxu1 %vm361_vm1, %v599_v49 }
 0x18e   : > { %v428_v50 = vpop.trf.xlu0 }
 0x192   : > { %v429_v51 = vpop.trf.xlu0 }
 0x193   : > { %v441_v52 = vpack.c.bf16 %v429_v51, %v428_v50 }
 0x194   : > { %v600_v53 = vld [vmem:[#allocation2 + $0x10] sm:$0xff] }
 0x195   : > { %449 = vst.msk [vmem:[#allocation2 + $0x18] sm:$0xff] %vm361_vm1, %v441_v52  ;;  %1118 = vmatprep.mubr.msk.bf16.mxu1 %vm361_vm1, %v600_v53 }
 0x196   : > { %v430_v55 = vpop.trf.xlu0 }
 0x19a   : > { %v431_v56 = vpop.trf.xlu0 }
 0x19b   : > { %v442_v57 = vpack.c.bf16 %v431_v56, %v430_v55 }
 0x19c   : > { %v601_v54 = vld [vmem:[#allocation2 + $0x18] sm:$0xff] }
 0x19d   : > { %1119 = vmatmul.mubr.msk.bf16.gmra.mrb[8].mxu1 %vm361_vm1, %v601_v54  ;;  %450 = vst.msk [vmem:[#allocation2 + $0x20] sm:$0xff] %vm361_vm1, %v442_v57 }
 0x19e   : > { %v432_v58 = vpop.trf.xlu0 }
 0x1a2   : > { %v433_v59 = vpop.trf.xlu0 }
 0x1a3   : > { %v443_v60 = vpack.c.bf16 %v433_v59, %v432_v58 }
 0x1a4   : > { %v602_v62 = vld [vmem:[#allocation2 + $0x20] sm:$0xff] }
 0x1a5   : > { %451 = vst.msk [vmem:[#allocation2 + $0x28] sm:$0xff] %vm361_vm1, %v443_v60  ;;  %1122 = vmatprep.mubr.msk.bf16.mxu1 %vm361_vm1, %v602_v62 }
 0x1a6   : > { %v434_v61 = vpop.trf.xlu0 }
 0x1aa   : > { %v435_v63 = vpop.trf.xlu0 }
 0x1ab   : > { %v444_v1 = vpack.c.bf16 %v435_v63, %v434_v61 }
 0x1ac   : > { %v603_v2 = vld [vmem:[#allocation2 + $0x28] sm:$0xff] }
 0x1ad   : > { %452 = vst.msk [vmem:[#allocation2 + $0x30] sm:$0xff] %vm361_vm1, %v444_v1  ;;  %1123 = vmatmul.mubr.msk.bf16.gmra.mrb[12].mxu1 %vm361_vm1, %v603_v2 }
 0x1ae   : > { %v436_v3 = vpop.trf.xlu0 }
 0x1b2   : > { %v437_v4 = vpop.trf.xlu0 }
 0x1b3   : > { %v445_v5 = vpack.c.bf16 %v437_v4, %v436_v3 }
 0x1b4   : > { %v604_v7 = vld [vmem:[#allocation2 + $0x30] sm:$0xff] }
 0x1b5   : > { %453 = vst.msk [vmem:[#allocation2 + $0x38] sm:$0xff] %vm361_vm1, %v445_v5  ;;  %1126 = vmatprep.mubr.msk.bf16.mxu1 %vm361_vm1, %v604_v7 }
 0x1bc   : > { %v605_v8 = vld [vmem:[#allocation2 + $0x38] sm:$0xff] }
 0x1bd   : > { %1127 = vmatmul.mubr.msk.bf16.gmra.mrb[16].mxu1 %vm361_vm1, %v605_v8 }
 0x260   : > { %v1116_v9 = vpop.f32.mrb[4].mxu1 }
 0x261   : > { %v664_v10 = vpop.f32.mrb[5].mxu1 }
 0x262   : > { %v1117_v11 = vpop.f32.mrb[6].mxu1 }
 0x263   : > { %v667_v12 = vpop.f32.mrb[7].mxu1 }
 0x270   : > { %v1120_v13 = vpop.f32.mrb[8].mxu1 }
 0x271   : > { %v778_v14 = vmax.f32 %v1116_v9, %v1120_v13  ;;  %v680_v15 = vpop.f32.mrb[9].mxu1 }
 0x272   : > { %v776_v16 = vmax.f32 %v664_v10, %v680_v15  ;;  %v1121_v17 = vpop.f32.mrb[10].mxu1 }
 0x273   : > { %v782_v18 = vmax.f32 %v778_v14, -1e+30  ;;  %v779_v19 = vmax.f32 %v1117_v11, %v1121_v17  ;;  %v683_v20 = vpop.f32.mrb[11].mxu1 }
 0x274   : > { %v780_v21 = vmax.f32 %v776_v16, -1e+30  ;;  %v777_v22 = vmax.f32 %v667_v12, %v683_v20 }
 0x275   : > { %v783_v23 = vmax.f32 %v779_v19, -1e+30  ;;  %v786_v25 = vmax.f32 %v782_v18, -1e+30 }
 0x276   : > { %v781_v24 = vmax.f32 %v777_v22, -1e+30  ;;  %v784_v27 = vmax.f32 %v780_v21, -1e+30 }
 0x277   : > { %v787_v26 = vmax.f32 %v783_v23, -1e+30 }
 0x278   : > { %v785_v28 = vmax.f32 %v781_v24, -1e+30 }
 0x279   : > { %v789_v30 = vmax.f32 %v786_v25, %v787_v26 }
 0x27a   : > { %v788_v31 = vmax.f32 %v784_v27, %v785_v28 }
 0x27c   : > { %v790_v32 = vmax.f32 %v788_v31, %v789_v30 }
 0x27e   : > { %v791_v33 = vrot.slane %v790_v32, 4 }
 0x280   : > { %v792_v35 = vmax.f32 %v790_v32, %v791_v33 }
 0x282   : > { %v793_v36 = vrot.slane %v792_v35, 2 }
 0x284   : > { %v794_v37 = vmax.f32 %v792_v35, %v793_v36 }
 0x286   : > { %v795_v39 = vrot.slane %v794_v37, 1 }
 0x288   : > { %v796_v40 = vmax.f32 %v794_v37, %v795_v39 }
 0x28a   : > { %v797_v41 = vmax.f32 %v796_v40, -1e+30 }
 0x28c   : > { %v801_v42 = vsub.f32 %v664_v10, %v797_v41  ;;  %v802_v43 = vsub.f32 %v667_v12, %v797_v41  ;;  %v803_v44 = vsub.f32 %v1116_v9, %v797_v41  ;;  %v804_v45 = vsub.f32 %v1117_v11, %v797_v41 }
 0x28d   : > { %v805_v46 = vsub.f32 %v680_v15, %v797_v41  ;;  %v806_v47 = vsub.f32 %v683_v20, %v797_v41  ;;  %v807_v48 = vsub.f32 %v1120_v13, %v797_v41  ;;  %v808_v50 = vsub.f32 %v1121_v17, %v797_v41 }
 0x28e   : > { %v817_v49 = vpack.c.bf16 %v802_v43, %v801_v42  ;;  %v818_v51 = vpack.c.bf16 %v804_v45, %v803_v44  ;;  %v798_v56 = vsub.f32 -1e+30, %v797_v41  ;;  %v1124_v41 = vpop.f32.mrb[12].mxu1 }
 0x28f   : > { %v819_v52 = vpack.c.bf16 %v806_v47, %v805_v46  ;;  %v820_v54 = vpack.c.bf16 %v808_v50, %v807_v48  ;;  %v696_v42 = vpop.f32.mrb[13].mxu1  ;;  %v936_v50 = vstv %s935_s13 }
 0x290   : > { %v826_v53 = vmul.bf16 1069105081, %v817_v49  ;;  %v829_v55 = vmul.bf16 1069105081, %v818_v51  ;;  %v821_v58 = vpack.c.bf16 %v798_v56, %v798_v56  ;;  %v799_v26 = vmul.f32 1.442695, %v798_v56 }
 0x291   : > { %v832_v57 = vmul.bf16 1069105081, %v819_v52  ;;  %v835_v59 = vmul.bf16 1069105081, %v820_v54  ;;  %v1125_v43 = vpop.f32.mrb[14].mxu1 }
 0x292   : > { %1218 = vpow.bf16 %v826_v53  ;;  %v838_v60 = vmul.bf16 1069105081, %v821_v58  ;;  %v699_v44 = vpop.f32.mrb[15].mxu1  ;;  %v939_v53 = vunpack.c.l.bf16 %v1441_v6  ;;  %v940_v58 = vunpack.c.h.bf16 %v1441_v6 }
 0x293   : > { %1220 = vpow.bf16 %v829_v55  ;;  %v1128_v45 = vpop.f32.mrb[16].mxu1 }
 0x294   : > { %1222 = vpow.bf16 %v832_v57  ;;  %v712_v46 = vpop.f32.mrb[17].mxu1 }
 0x295   : > { %1224 = vpow.bf16 %v835_v59  ;;  %v1129_v47 = vpop.f32.mrb[18].mxu1 }
 0x296   : > { %1226 = vpow.bf16 %v838_v60  ;;  %v715_v48 = vpop.f32.mrb[19].mxu1 }
 0x297   : > { %1228 = vpow2.f32 %v799_v26 }
 0x29d   : > { %v1219_v61 = vpop.eup %1218 }
 0x29e   : > { %v1221_v62 = vpop.eup %1220  ;;  %v850_v63 = vunpack.c.l.bf16 %v1219_v61  ;;  %v851_v1 = vunpack.c.h.bf16 %v1219_v61  ;;  %1131 = vmatpush3.bf16.msra.mxu0 %v1219_v61 }
 0x29f   : > { %1132 = vmatprep.subr.bf16.mxu0 %v1312_v0  ;;  %v852_v2 = vunpack.c.l.bf16 %v1221_v62  ;;  %v1223_v4 = vpop.eup %1222  ;;  %v853_v5 = vunpack.c.h.bf16 %v1221_v62 }
 0x2a0   : > { %v866_v3 = vadd.f32 %v851_v1, %v850_v63  ;;  %v854_v8 = vunpack.c.l.bf16 %v1223_v4  ;;  %v1225_v10 = vpop.eup %1224  ;;  %v855_v11 = vunpack.c.h.bf16 %v1223_v4 }
 0x2a1   : > { %v856_v14 = vunpack.c.l.bf16 %v1225_v10  ;;  %v1227_v15 = vpop.eup %1226  ;;  %v857_v16 = vunpack.c.h.bf16 %v1225_v10 }
 0x2a2   : > { %v867_v7 = vadd.f32 %v866_v3, %v852_v2  ;;  %1133 = vmatpush3.bf16.msra.mxu0 %v1221_v62  ;;  %v858_v18 = vunpack.c.l.bf16 %v1227_v15  ;;  %v859_v20 = vunpack.c.h.bf16 %v1227_v15  ;;  %v1229_v36 = vpop.eup %1228 }
 0x2a3   : > { %1134 = vmatprep.subr.bf16.mxu0 %v1312_v0  ;;  %v849_v39 = vmul.f32 0.0, %v1229_v36 }
 0x2a4   : > { %v868_v9 = vadd.f32 %v867_v7, %v853_v5 }
 0x2a6   : > { %v869_v12 = vadd.f32 %v868_v9, %v854_v8  ;;  %1135 = vmatpush3.bf16.msra.mxu0 %v1223_v4 }
 0x2a7   : > { %1136 = vmatprep.subr.bf16.mxu0 %v1312_v0 }
 0x2a8   : > { %v870_v13 = vadd.f32 %v869_v12, %v855_v11 }
 0x2aa   : > { %1137 = vmatpush3.bf16.msra.mxu0 %v1225_v10  ;;  %v871_v17 = vadd.f32 %v870_v13, %v856_v14 }
 0x2ab   : > { %1138 = vmatprep.subr.bf16.mxu0 %v1312_v0 }
 0x2ac   : > { %v872_v19 = vadd.f32 %v871_v17, %v857_v16 }
 0x2ae   : > { %1139 = vmatpush3.bf16.msra.mxu0 %v1227_v15  ;;  %v873_v21 = vadd.f32 %v872_v19, %v858_v18 }
 0x2af   : > { %1140 = vmatprep.subr.bf16.mxu0 %v1312_v0 }
 0x2b0   : > { %v874_v22 = vadd.f32 %v873_v21, %v859_v20 }
 0x2b2   : > { %1141 = vmatpush3.bf16.msra.mxu0 %v1227_v15  ;;  %v875_v23 = vadd.f32 %v874_v22, %v858_v18 }
 0x2b3   : > { %1142 = vmatprep.subr.bf16.mxu0 %v1312_v0 }
 0x2b4   : > { %v876_v24 = vadd.f32 %v875_v23, %v859_v20 }
 0x2b6   : > { %1143 = vmatpush3.bf16.msra.mxu0 %v1227_v15  ;;  %v877_v25 = vadd.f32 %v876_v24, %v858_v18 }
 0x2b7   : > { %1144 = vmatprep.subr.bf16.mxu0 %v1312_v0 }
 0x2b8   : > { %v878_v27 = vadd.f32 %v877_v25, %v859_v20 }
 0x2ba   : > { %1145 = vmatpush3.bf16.msra.mxu0 %v1227_v15  ;;  %v879_v28 = vadd.f32 %v878_v27, %v858_v18 }
 0x2bc   : > { %v880_v30 = vadd.f32 %v879_v28, %v859_v20 }
 0x2bd   : > { %1147 = vmatmul.mubr.bf16.vlgmr.msra.gmra.mrb[8].mxu0 %v517_v38 }
 0x2be   : > { %v881_v31 = vrot.slane %v880_v30, 4 }
 0x2c0   : > { %v882_v32 = vadd.f32 %v881_v31, %v880_v30 }
 0x2c2   : > { %v883_v33 = vrot.slane %v882_v32, 2 }
 0x2c4   : > { %v884_v35 = vadd.f32 %v883_v33, %v882_v32 }
 0x2c6   : > { %v885_v37 = vrot.slane %v884_v35, 1 }
 0x2c8   : > { %v886_v40 = vadd.f32 %v885_v37, %v884_v35 }
 0x2ca   : > { %v887_v0 = vadd.f32 %v886_v40, %v849_v39 }
 0x2cc   : > { %1230 = vrcp.f32 %v887_v0 }
 0x2d6   : > { %v1231_v49 = vpop.eup %1230 }
 0x390   : > { %v923_v29 = vpop.f32.mrb[8].mxu0 }
 0x391   : > { %v930_v34 = vadd.f32 %v923_v29, %v849_v39  ;;  %v1148_v38 = vpop.f32.mrb[9].mxu0 }
 0x392   : > { %v926_v51 = vpop.f32.mrb[10].mxu0 }
 0x393   : > { %v933_v52 = vmul.f32 %v1231_v49, %v930_v34  ;;  %v931_v54 = vadd.f32 %v926_v51, %v849_v39  ;;  %v1149_v55 = vpop.f32.mrb[11].mxu0 }
 0x395   : > { %v937_v56 = vmul.f32 %v936_v50, %v933_v52  ;;  %v934_v57 = vmul.f32 %v1231_v49, %v931_v54 }
 0x397   : > { %v941_v59 = vadd.f32 %v939_v53, %v937_v56  ;;  %v938_v60 = vmul.f32 %v936_v50, %v934_v57 }
 0x399   : > { %943 = vst [vmem:[%s322_s21] sm:$0xff] %v941_v59  ;;  %v942_v61 = vadd.f32 %v940_v58, %v938_v60 }
 0x39b   : > { %944 = vst [vmem:[%s322_s21 + $0x8] sm:$0xff] %v942_v61 }
 0x39c   : > { %1245 = shalt.err (!%p1242_p5)
}
 0x39d   : > { %s1246_s13 = scalar_lea.hbm %s1510_s25, 256  ;;  %s1250_s20 = scalar_lea.hbm %s1568_s8, 512 }
 0x39e   : > { %p1247_p6 = scmp.ne.s32.totalorder %s1510_s25, %s1246_s13  ;;  %p1251_p10 = scmp.lt.u32.totalorder %s1510_s25, %s1568_s8 }
 0x39f   : > { %p1252_p11 = scmp.lt.u32.totalorder %s1250_s20, %s1246_s13  ;;  %p1254_p13 = scmp.lt.u32.totalorder %s1246_s13, %s1510_s25 }
 0x3a0   : > { %p1248_p7 = pnand %p1247_p6, %p1406_p4 }
 0x3a1   : > { %p1253_p12 = por %p1252_p11, %p1251_p10 }
 0x3a2   : > { %p1249_p9 = pneg %p1248_p7 }
 0x3a3   : > { %p1255_p0 = por %p1254_p13, %p1253_p12 }
 0x3a5   : > { %p1256_p1 = pnand %p1255_p0, %p1249_p9 }
 0x3a7   : > { %1259 = shalt.err (!%p1256_p1)
}
 0x3a8   : > { %s1316_s24 = smov 128   ;;  %s1317_s10 = smov 8  }
 0x3a9   : > { %1150 = dma.vmem_to_hbm [thread:$0]  (%p1406_p4), %s1512_s22, 256, %s1510_s25, %s1514_s26, %s1316_s24, %s1316_s24, %s1317_s10  }
 0x3aa PF: > { %p1156_p2 = scmp.ge.s32.totalorder %s1310_s12, 2  ;;  %s976_s27 = sand.u32 1, %s1290_s29  }
 0x3ab   : > { %s977_s28 = scalar_lea.sflag [#allocation6], %s976_s27 }
 0x3ac   : > { %p1153_p3 = pnand %p1156_p2, %p1413_p8 }
 0x3ae   : > { %1285 = dma.done.wait (!%p1153_p3), %s977_s28, 256  }
 0x3af   : > { %1287 = vsyncadd (!%p1153_p3), %s977_s28, 4294967040  ;;  %s22_s12 = sadd.s32 1, %s1310_s12   ;;  %s1571_s29 = smov %s1294_s30 }
 0x3b0   : > { %p19_p5 = scmp.ge.s32.totalorder %s22_s12, 4   ;;  %s1572_s30 = smov %s1298_s9 }
 0x3b1   : > { %s1573_s9 = smov %s1419_s19  ;;  %s1574_s10 = smov %s1306_s11 }
 0x3b2   : > { %s1575_s11 = smov %s1577_s14  ;;  %21 = sbr.rel (!%p19_p5) target bundleno = 6 (0x6), region = 92 }
 0x3b9   :  { %982 = vsyncpa [#allocation6], 1 }
 0x3ba   :  { %984 = vsyncpa [#allocation6 + $0x1], 1 }

</bundles_post_ra>
